<compile_context>
chip_gen: v6e
topology: v6e:2x2x1
jax: 0.10.0
libtpu: 0.0.40
codegen_flags: <defaults>
</compile_context>

<pallas_src>
import functools

import jax
import jax.numpy as jnp
from jax import lax
from jax.experimental import pallas as pl
from jax.experimental.pallas import tpu as pltpu

THETA = 5.0
ALPHA = 2.5  # only used by the unused ign_loss branch in the reference

LANE = 128       # vreg lane width
SUBLANE = 8      # vreg sublane rows
TM_MAX = 2048    # rows per grid step: (2048, 128) f32 block = 1 MiB


def _czx_kernel(x_ref, t_ref, sum_ref, cnt_ref, *, theta, n_valid, tm,
                need_tail_mask):
    i = pl.program_id(0)

    x = x_ref[...].astype(jnp.float32)     # (tm, LANE)
    t = t_ref[...].astype(jnp.float32)

    mask = t > theta                       # imp_index
    if need_tail_mask:
        # Mask out padded / out-of-bounds elements by flat element index.
        row_iota = lax.broadcasted_iota(jnp.int32, (tm, LANE), 0)
        col_iota = lax.broadcasted_iota(jnp.int32, (tm, LANE), 1)
        elem = (i * tm + row_iota) * LANE + col_iota
        mask = jnp.logical_and(mask, elem < n_valid)

    d = x - t
    sq = jnp.where(mask, d * d, 0.0)
    cnt = jnp.where(mask, 1.0, 0.0)

    # Fold (tm, LANE) -> (SUBLANE, LANE) with element-wise adds only; the
    # final cross-lane reduction happens in the wrapper.
    sum_ref[...] = jnp.sum(sq.reshape(tm // SUBLANE, SUBLANE, LANE), axis=0)[None]
    cnt_ref[...] = jnp.sum(cnt.reshape(tm // SUBLANE, SUBLANE, LANE), axis=0)[None]


def czx_loss(inputs, targets, theta=THETA, *, block_rows=TM_MAX):
    """Pallas implementation of CZXLoss.forward (returns imp_loss)."""
    theta = float(theta)

    x = inputs.reshape(-1)
    t = targets.reshape(-1)
    n = x.shape[0]

    # Pad only to (8*128) granularity so a lane-dense 2-D view exists; the
    # pad value never matters because the kernel masks by element index.
    align = SUBLANE * LANE
    n_pad = ((n + align - 1) // align) * align
    if n_pad != n:
        x = jnp.pad(x, (0, n_pad - n))
        t = jnp.pad(t, (0, n_pad - n))

    rows = n_pad // LANE                         # multiple of SUBLANE
    tm = max(SUBLANE, min(int(block_rows) // SUBLANE * SUBLANE, rows))
    num_blocks = (rows + tm - 1) // tm
    need_tail_mask = (num_blocks * tm * LANE) != n

    x2 = x.reshape(rows, LANE)
    t2 = t.reshape(rows, LANE)

    kernel = functools.partial(
        _czx_kernel, theta=theta, n_valid=n, tm=tm,
        need_tail_mask=need_tail_mask)

    sum_part, cnt_part = pl.pallas_call(
        kernel,
        out_shape=(
            jax.ShapeDtypeStruct((num_blocks, SUBLANE, LANE), jnp.float32),
            jax.ShapeDtypeStruct((num_blocks, SUBLANE, LANE), jnp.float32),
        ),
        grid_spec=pltpu.PrefetchScalarGridSpec(
            num_scalar_prefetch=0,
            grid=(num_blocks,),
            in_specs=[
                pl.BlockSpec((tm, LANE), lambda i: (i, 0)),
                pl.BlockSpec((tm, LANE), lambda i: (i, 0)),
            ],
            out_specs=[
                pl.BlockSpec((1, SUBLANE, LANE), lambda i: (i, 0, 0)),
                pl.BlockSpec((1, SUBLANE, LANE), lambda i: (i, 0, 0)),
            ],
        ),
        compiler_params=pltpu.CompilerParams(
            # Independent tiles (each writes its own output slot) -> parallel,
            # which lets v7x shard the grid across both TensorCores.
            dimension_semantics=("parallel",),
        ),
    )(x2, t2)

    num = jnp.sum(sum_part)
    den = jnp.sum(cnt_part)
    # 0/0 -> NaN matches torch MSELoss over an empty selection.
    return num / den


def czx_loss_ref(inputs, targets, theta=THETA):
    """Plain-JAX reference matching the PyTorch semantics."""
    x = inputs.reshape(-1).astype(jnp.float32)
    t = targets.reshape(-1).astype(jnp.float32)
    mask = t > theta
    d = x - t
    num = jnp.sum(jnp.where(mask, d * d, 0.0))
    den = jnp.sum(mask.astype(jnp.float32))
    return num / den


if __name__ == "__main__":
    key = jax.random.PRNGKey(0)
    k1, k2, k3, k4 = jax.random.split(key, 4)

    # Case 1: aligned NCHW-like tensor, default theta, single tile.
    shape = (2, 4, 16, 16)
    targets = jax.random.uniform(k1, shape, jnp.float32, minval=0.0, maxval=10.0)
    inputs = targets + jax.random.normal(k2, shape, jnp.float32)

    loss = jax.block_until_ready(czx_loss(inputs, targets))
    ref = czx_loss_ref(inputs, targets)
    assert jnp.isfinite(loss), "loss is not finite"
    assert jnp.allclose(loss, ref, rtol=1e-5, atol=1e-5), (loss, ref)

    # Case 2: multi-block grid (parallel axis) and non-default theta.
    loss2 = jax.block_until_ready(czx_loss(inputs, targets, theta=3.0,
                                           block_rows=8))
    ref2 = czx_loss_ref(inputs, targets, theta=3.0)
    assert jnp.allclose(loss2, ref2, rtol=1e-5, atol=1e-5), (loss2, ref2)

    # Case 3: unaligned element count (exercises the in-kernel tail mask).
    shape3 = (3, 5, 7, 11)  # 1155 elements
    targets3 = jax.random.uniform(k3, shape3, jnp.float32, minval=0.0, maxval=10.0)
    inputs3 = targets3 + jax.random.normal(k4, shape3, jnp.float32)
    loss3 = jax.block_until_ready(czx_loss(inputs3, targets3))
    ref3 = czx_loss_ref(inputs3, targets3)
    assert jnp.allclose(loss3, ref3, rtol=1e-5, atol=1e-5), (loss3, ref3)

    print("KERNEL_OK")
</pallas_src>

<mosaic_0001>
module attributes {stable_mosaic.version = 11 : i64} {
  func.func @_czx_kernel(%arg0: i32, %arg1: memref<16x128xf32, #tpu.memory_space<vmem>>, %arg2: memref<16x128xf32, #tpu.memory_space<vmem>>, %arg3: memref<1x8x128xf32, #tpu.memory_space<vmem>>, %arg4: memref<1x8x128xf32, #tpu.memory_space<vmem>>) attributes {dimension_semantics = [#tpu.dimension_semantics<parallel>], iteration_bounds = array<i64: 1>, scalar_prefetch = 0 : i64, scratch_operands = 0 : i64, tpu.core_type = #tpu.core_type<tc>, window_params = [{transform_indices = @transform_0, window_bounds = array<i64: 16, 128>}, {transform_indices = @transform_1, window_bounds = array<i64: 16, 128>}, {transform_indices = @transform_2, window_bounds = array<i64: 1, 8, 128>}, {transform_indices = @transform_3, window_bounds = array<i64: 1, 8, 128>}]} {
    %c0 = arith.constant 0 : index
    %c0_0 = arith.constant 0 : index
    %0 = vector.load %arg1[%c0, %c0_0] : memref<16x128xf32, #tpu.memory_space<vmem>>, vector<16x128xf32>
    %c0_1 = arith.constant 0 : index
    %c0_2 = arith.constant 0 : index
    %1 = vector.load %arg2[%c0_1, %c0_2] : memref<16x128xf32, #tpu.memory_space<vmem>>, vector<16x128xf32>
    %cst = arith.constant 5.000000e+00 : f32
    %2 = vector.broadcast %cst : f32 to vector<16x128xf32>
    %3 = arith.cmpf ogt, %1, %2 : vector<16x128xf32>
    %4 = arith.subf %0, %1 : vector<16x128xf32>
    %5 = arith.mulf %4, %4 : vector<16x128xf32>
    %cst_3 = arith.constant 0.000000e+00 : f32
    %6 = vector.broadcast %cst_3 : f32 to vector<16x128xf32>
    %7 = arith.select %3, %5, %6 : vector<16x128xi1>, vector<16x128xf32>
    %cst_4 = arith.constant 1.000000e+00 : f32
    %cst_5 = arith.constant 0.000000e+00 : f32
    %8 = vector.broadcast %cst_4 : f32 to vector<16x128xf32>
    %9 = vector.broadcast %cst_5 : f32 to vector<16x128xf32>
    %10 = arith.select %3, %8, %9 : vector<16x128xi1>, vector<16x128xf32>
    %11 = vector.shape_cast %7 : vector<16x128xf32> to vector<2x8x128xf32>
    %cst_6 = arith.constant dense<0.000000e+00> : vector<8x128xf32>
    %12 = vector.multi_reduction <add>, %11, %cst_6 [0] : vector<2x8x128xf32> to vector<8x128xf32>
    %13 = vector.shape_cast %12 : vector<8x128xf32> to vector<1x8x128xf32>
    %c0_7 = arith.constant 0 : index
    %c0_8 = arith.constant 0 : index
    %c0_9 = arith.constant 0 : index
    %14 = vector.load %arg3[%c0_7, %c0_8, %c0_9] : memref<1x8x128xf32, #tpu.memory_space<vmem>>, vector<1x8x128xf32>
    tpu.vector_store %arg3[%c0_7, %c0_8, %c0_9], %13 {strides = array<i32>} : memref<1x8x128xf32, #tpu.memory_space<vmem>>, vector<1x8x128xf32>,
    %15 = vector.shape_cast %10 : vector<16x128xf32> to vector<2x8x128xf32>
    %cst_10 = arith.constant dense<0.000000e+00> : vector<8x128xf32>
    %16 = vector.multi_reduction <add>, %15, %cst_10 [0] : vector<2x8x128xf32> to vector<8x128xf32>
    %17 = vector.shape_cast %16 : vector<8x128xf32> to vector<1x8x128xf32>
    %c0_11 = arith.constant 0 : index
    %c0_12 = arith.constant 0 : index
    %c0_13 = arith.constant 0 : index
    %18 = vector.load %arg4[%c0_11, %c0_12, %c0_13] : memref<1x8x128xf32, #tpu.memory_space<vmem>>, vector<1x8x128xf32>
    tpu.vector_store %arg4[%c0_11, %c0_12, %c0_13], %17 {strides = array<i32>} : memref<1x8x128xf32, #tpu.memory_space<vmem>>, vector<1x8x128xf32>,
    return
  }
  func.func @transform_0(%arg0: i32) -> (i32, i32) {
    %c0_i32 = arith.constant 0 : i32
    %c0_i32_0 = arith.constant 0 : i32
    return %arg0, %c0_i32 : i32, i32
  }
  func.func @transform_1(%arg0: i32) -> (i32, i32) {
    %c0_i32 = arith.constant 0 : i32
    %c0_i32_0 = arith.constant 0 : i32
    return %arg0, %c0_i32 : i32, i32
  }
  func.func @transform_2(%arg0: i32) -> (i32, i32, i32) {
    %c0_i32 = arith.constant 0 : i32
    %c0_i32_0 = arith.constant 0 : i32
    %c0_i32_1 = arith.constant 0 : i32
    return %arg0, %c0_i32, %c0_i32_0 : i32, i32, i32
  }
  func.func @transform_3(%arg0: i32) -> (i32, i32, i32) {
    %c0_i32 = arith.constant 0 : i32
    %c0_i32_0 = arith.constant 0 : i32
    %c0_i32_1 = arith.constant 0 : i32
    return %arg0, %c0_i32, %c0_i32_0 : i32, i32, i32
  }
}

</mosaic_0001>

<bundles_post_ra>
// kernel: tpu_custom_call.1
= control target key start
LH: loop header
LB: loop body
LE: loop exit
PB: predicated region body
PF: predicated region fallthrough
CT: control target
= control target key end

     0   :  { %9 = vsyncpa [#allocation3], 0  ;;  %s225_s0 = inlined_call_operand.hbm [shape: f32[16,128], index: 0, kind: input, shape index: {}]   ;;  %s226_s1 = inlined_call_operand.hbm [shape: f32[16,128], index: 1, kind: input, shape index: {}]   ;;  %s227_s2 = inlined_call_operand.hbm [shape: f32[1,8,128], index: 2, kind: output, shape index: {0}]   ;;  %s228_s3 = inlined_call_operand.hbm [shape: f32[1,8,128], index: 3, kind: output, shape index: {1}]  }
   0x1   :  { %10 = vsyncpa [#allocation6], 0 }
   0x2   :  { %11 = vsyncpa [#allocation4], 0 }
   0x3   :  { %12 = vsyncpa [#allocation9], 0  ;;  %s186_s12 = smov [#allocation2]  }
   0x4   :  { %s18_s13 = sshll.u32 %s186_s12, 4  ;;  %s19_s13 = int_to_ptr.vmem [resolvable:$true] %s18_s13 }
   0x5   :  { %s106_s14 = scalar_lea.vmem %s19_s13, 256  ;;  %p111_p1 = scmp.lt.s32.totalorder %s19_s13, %s19_s13 }
   0x6   :  { %p107_p0 = scmp.ne.s32.totalorder %s19_s13, %s106_s14  ;;  %p112_p2 = scmp.lt.s32.totalorder %s106_s14, %s106_s14 }
   0x8   :  { %p113_p3 = por %p112_p2, %p111_p1 }
   0xa   :  { %p114_p4 = pnand %p113_p3, %p107_p0 }
   0xc   :  { %117 = shalt.err (!%p114_p4)
}
   0xd   :  { %s187_s15 = smov 128   ;;  %s188_s16 = smov 8  }
   0xe   :  { %24 = dma.hbm_to_vmem [thread:$0]  %s225_s0, 256, %s19_s13, [#allocation3], %s187_s15, %s187_s15, %s188_s16  }
   0xf   :  { %s189_s19 = smov [#allocation5]  }
  0x10   :  { %s30_s20 = sshll.u32 %s189_s19, 4  ;;  %s31_s20 = int_to_ptr.vmem [resolvable:$true] %s30_s20 }
  0x11   :  { %s126_s21 = scalar_lea.vmem %s31_s20, 256  ;;  %p131_p6 = scmp.lt.s32.totalorder %s31_s20, %s31_s20 }
  0x12   :  { %p127_p5 = scmp.ne.s32.totalorder %s31_s20, %s126_s21  ;;  %p132_p7 = scmp.lt.s32.totalorder %s126_s21, %s126_s21 }
  0x14   :  { %p133_p8 = por %p132_p7, %p131_p6 }
  0x16   :  { %p134_p9 = pnand %p133_p8, %p127_p5 }
  0x18   :  { %137 = shalt.err (!%p134_p9)
}
  0x19   :  { %36 = dma.hbm_to_vmem [thread:$0]  %s226_s1, 256, %s31_s20, [#allocation6], %s187_s15, %s187_s15, %s188_s16  }
  0x1a   :  { %178 = dma.done.wait [#allocation3], 256  }
  0x1b   :  { %179 = vsyncadd [#allocation3], 4294967040 }
  0x1c   :  { %180 = dma.done.wait [#allocation6], 256  }
  0x1d   :  { %181 = vsyncadd [#allocation6], 4294967040  ;;  %v43_v0 = vld [vmem:[#allocation2] sm:$0xff]  ;;  %v44_v1 = vld [vmem:[#allocation2 + $0x8] sm:$0xff]  ;;  %s190_s0 = smov [#allocation8]   ;;  %v191_v6 = vmov 0.0  }
  0x1e   :  { %v45_v2 = vld [vmem:[#allocation5] sm:$0xff]  ;;  %v46_v3 = vld [vmem:[#allocation5 + $0x8] sm:$0xff]  ;;  %s77_s24 = sshll.u32 %s190_s0, 4  ;;  %s192_s25 = smov [#allocation7]   ;;  %s78_s24 = int_to_ptr.vmem [resolvable:$true] %s77_s24 }
  0x1f   :  { %vm47_vm0 = vcmp.gt.f32.partialorder %v45_v2, 5.0  ;;  %v49_v4 = vsub.f32 %v43_v0, %v45_v2  ;;  %vm48_vm1 = vcmp.gt.f32.partialorder %v46_v3, 5.0  ;;  %v50_v5 = vsub.f32 %v44_v1, %v46_v3  ;;  %s67_s1 = sshll.u32 %s192_s25, 4  ;;  %s138_s26 = scalar_lea.vmem %s78_s24, 128  ;;  %s68_s1 = int_to_ptr.vmem [resolvable:$true] %s67_s1 }
  0x20   :  { %v55_v7 = vsel %vm47_vm0, 1.0, %v191_v6  ;;  %v56_v9 = vsel %vm48_vm1, 1.0, %v191_v6  ;;  %p139_p10 = scmp.ne.s32.totalorder %s78_s24, %s138_s26  ;;  %p143_p11 = scmp.lt.s32.totalorder %s78_s24, %s78_s24 }
  0x21   :  { %v51_v8 = vmul.f32 %v49_v4, %v49_v4  ;;  %v52_v10 = vmul.f32 %v50_v5, %v50_v5  ;;  %v59_v11 = vadd.f32 %v56_v9, %v55_v7  ;;  %p144_p12 = scmp.lt.s32.totalorder %s138_s26, %s138_s26 }
  0x23   :  { %v53_v12 = vsel %vm47_vm0, %v51_v8, 0.0  ;;  %v54_v13 = vsel %vm48_vm1, %v52_v10, 0.0  ;;  %60 = vst [vmem:[#allocation8] sm:$0xff] %v59_v11  ;;  %p145_p13 = por %p144_p12, %p143_p11 }
  0x24   :  { %v57_v14 = vadd.f32 %v54_v13, %v53_v12 }
  0x25   :  { %p146_p0 = pnand %p145_p13, %p139_p10 }
  0x27   :  { %149 = shalt.err (!%p146_p0)
}
  0x28   :  { %80 = dma.vmem_to_hbm [thread:$0]  %s78_s24, 128, %s228_s3, [#allocation9]   ;;  %58 = vst [vmem:[#allocation7] sm:$0xff] %v57_v14 }
  0x29   :  { %s158_s29 = scalar_lea.vmem %s68_s1, 128  ;;  %p163_p2 = scmp.lt.s32.totalorder %s68_s1, %s68_s1 }
  0x2a   :  { %p159_p1 = scmp.ne.s32.totalorder %s68_s1, %s158_s29  ;;  %p164_p3 = scmp.lt.s32.totalorder %s158_s29, %s158_s29 }
  0x2c   :  { %p165_p4 = por %p164_p3, %p163_p2 }
  0x2e   :  { %p166_p5 = pnand %p165_p4, %p159_p1 }
  0x30   :  { %169 = shalt.err (!%p166_p5)
}
  0x31   :  { %70 = dma.vmem_to_hbm [thread:$0]  %s68_s1, 128, %s227_s2, [#allocation4]  }
  0x32   :  { %182 = dma.done.wait [#allocation4], 128  }
  0x33   :  { %183 = vsyncadd [#allocation4], 4294967168 }
  0x34   :  { %184 = dma.done.wait [#allocation9], 128  }
  0x35   :  { %185 = vsyncadd [#allocation9], 4294967168 }
  0x36   :  { %87 = vsyncpa [#allocation3], 1 }
  0x37   :  { %88 = vsyncpa [#allocation6], 1 }
  0x38   :  { %89 = vsyncpa [#allocation4], 1 }
  0x39   :  { %90 = vsyncpa [#allocation9], 1 }

</bundles_post_ra>
